<compile_context>
chip_gen: v5e
topology: v5e:2x2
jax: 0.10.0
libtpu: 0.0.40
codegen_flags: <defaults>
</compile_context>

<pallas_src>
import functools

import jax
import jax.numpy as jnp
from jax import lax
from jax.experimental import pallas as pl
from jax.experimental.pallas import tpu as pltpu


def _round_up(x, m):
    return (x + m - 1) // m * m


def _pick_tm(n_tokens):
    """Token-tile size along the (parallel) N axis.

    Prefer a divisor of N (avoids an N-padding pass in HBM) that still yields
    >= 2 grid steps (megacore sharding / v7x's two TensorCores), capped at 512
    rows — the measured HBM-roofline sweet spot for mem-bound tiles.
    Returns (tm, n_pad_rows).
    """
    for tm in (512, 448, 384, 320, 256, 192, 128, 96, 64, 48, 32, 24, 16, 8):
        if 2 * tm <= n_tokens and n_tokens % tm == 0:
            return tm, 0
    if n_tokens >= 1024:
        tm = 512
    elif n_tokens >= 16:
        tm = _round_up((n_tokens + 1) // 2, 8)   # two roughly balanced steps
    else:
        tm = _round_up(max(n_tokens, 1), 8)
    return tm, (-n_tokens) % tm


# ---------------------------------------------------------------------------
# Kernel: out[i, :] = LayerNorm?( patches[i, :] @ W + b )
# grid = (N_pad // tm,)  — single "parallel" axis; K fits in one block.
# ---------------------------------------------------------------------------
def _patch_embed_kernel(x_ref, w_ref, b_ref, *rest, eps, use_norm):
    if use_norm:
        g_ref, beta_ref, o_ref = rest
    else:
        (o_ref,) = rest

    # Single-pass GEMM epilogue: no K grid axis, no accumulator scratch.
    # DEFAULT matmul precision (MXU-native operand rounding), f32 accumulate.
    z = jnp.dot(x_ref[...], w_ref[...], preferred_element_type=jnp.float32)
    z = z + b_ref[...].astype(jnp.float32)

    if use_norm:
        # Two-pass LayerNorm over the (unpadded) embed dim — matches
        # torch.nn.LayerNorm (biased variance), numerically robust.
        mean = jnp.mean(z, axis=-1, keepdims=True)
        zc = z - mean
        var = jnp.mean(zc * zc, axis=-1, keepdims=True)
        inv = lax.rsqrt(var + eps)
        z = zc * inv * g_ref[...].astype(jnp.float32) \
            + beta_ref[...].astype(jnp.float32)

    o_ref[...] = z.astype(o_ref.dtype)


# ---------------------------------------------------------------------------
# Wrapper: minimal layout plumbing around the Pallas GEMM.
# ---------------------------------------------------------------------------
def patch_embed_forward(x, weight, bias, gamma=None, beta=None, *,
                        patch_size=(4, 4), eps=1e-5, output_format="NCHW"):
    B, C, H, W = x.shape
    ph, pw = patch_size
    E = weight.shape[0]

    # Same zero padding as F.pad in the reference (pad right/bottom).
    pad_h = (-H) % ph
    pad_w = (-W) % pw
    if pad_h or pad_w:
        x = jnp.pad(x, ((0, 0), (0, 0), (0, pad_h), (0, pad_w)))
    Hp = (H + pad_h) // ph
    Wp = (W + pad_w) // pw

    K = C * ph * pw
    N = B * Hp * Wp

    # Patchify: one XLA transpose; K kept UNPADDED — the kernel's blocks use
    # the full-extent last dim, so no 128-lane zero padding ever hits HBM.
    patches = x.reshape(B, C, Hp, ph, Wp, pw)
    patches = patches.transpose(0, 2, 4, 1, 3, 5).reshape(N, K)
    w2d = weight.reshape(E, K).T                   # (K, E); (C,ph,pw) flatten
    b2d = bias.reshape(1, E)

    use_norm = gamma is not None

    tm, n_pad = _pick_tm(N)
    if n_pad:
        patches = jnp.pad(patches, ((0, n_pad), (0, 0)))
    N_pad = N + n_pad
    grid = (N_pad // tm,)

    in_specs = [
        pl.BlockSpec((tm, K), lambda i: (i, 0)),   # patches tile
        pl.BlockSpec((K, E), lambda i: (0, 0)),    # weight (whole, resident)
        pl.BlockSpec((1, E), lambda i: (0, 0)),    # bias
    ]
    operands = [patches, w2d, b2d]
    if use_norm:
        in_specs += [pl.BlockSpec((1, E), lambda i: (0, 0)),   # gamma
                     pl.BlockSpec((1, E), lambda i: (0, 0))]   # beta
        operands += [gamma.reshape(1, E), beta.reshape(1, E)]

    out = pl.pallas_call(
        functools.partial(_patch_embed_kernel, eps=eps, use_norm=use_norm),
        out_shape=jax.ShapeDtypeStruct((N_pad, E), x.dtype),
        grid=grid,
        in_specs=in_specs,
        out_specs=pl.BlockSpec((tm, E), lambda i: (i, 0)),
        compiler_params=pltpu.CompilerParams(
            dimension_semantics=("parallel",)),
    )(*operands)

    out = out[:N].reshape(B, Hp, Wp, E)
    if output_format == "NHWC":
        return out                                  # (B, Hp, Wp, E), no extra transpose
    return out.transpose(0, 3, 1, 2)                # NCHW, matches the PyTorch module


# ---------------------------------------------------------------------------
# Module-style wrapper mirroring the PyTorch PatchEmbed.
# ---------------------------------------------------------------------------
class PatchEmbed:
    def __init__(self, patch_size=4, in_chans=3, embed_dim=96, use_norm=False,
                 *, key, dtype=jnp.float32):
        if isinstance(patch_size, int):
            patch_size = (patch_size, patch_size)
        self.patch_size = patch_size
        self.in_chans = in_chans
        self.embed_dim = embed_dim

        ph, pw = patch_size
        fan_in = in_chans * ph * pw
        bound = 1.0 / (fan_in ** 0.5)
        kw, kb, kg, kbt = jax.random.split(key, 4)
        # Conv2d(in_chans, embed_dim, kernel=stride=patch_size) params (OIHW).
        self.weight = jax.random.uniform(
            kw, (embed_dim, in_chans, ph, pw), dtype, -bound, bound)
        self.bias = jax.random.uniform(kb, (embed_dim,), dtype, -bound, bound)
        if use_norm:
            self.gamma = jax.random.uniform(kg, (embed_dim,), dtype, 0.5, 1.5)
            self.beta = 0.1 * jax.random.normal(kbt, (embed_dim,), dtype)
        else:
            self.gamma = None
            self.beta = None

    def __call__(self, x, output_format="NCHW"):
        return patch_embed_forward(
            x, self.weight, self.bias, self.gamma, self.beta,
            patch_size=self.patch_size, output_format=output_format)


# ---------------------------------------------------------------------------
# Pure-JAX f32 reference (independent of the kernel's patchify path).
# ---------------------------------------------------------------------------
def _reference(x, weight, bias, gamma, beta, patch_size, eps=1e-5):
    ph, pw = patch_size
    _, _, H, W = x.shape
    pad_h = (-H) % ph
    pad_w = (-W) % pw
    if pad_h or pad_w:
        x = jnp.pad(x, ((0, 0), (0, 0), (0, pad_h), (0, pad_w)))
    y = lax.conv_general_dilated(
        x, weight, window_strides=(ph, pw), padding="VALID",
        dimension_numbers=("NCHW", "OIHW", "NCHW"),
        precision=lax.Precision.HIGHEST)
    y = y + bias.reshape(1, -1, 1, 1)
    if gamma is not None:
        B, E, Hp, Wp = y.shape
        t = y.reshape(B, E, Hp * Wp).transpose(0, 2, 1)     # (B, L, E)
        mean = t.mean(-1, keepdims=True)
        var = t.var(-1, keepdims=True)
        t = (t - mean) / jnp.sqrt(var + eps) * gamma + beta
        y = t.transpose(0, 2, 1).reshape(B, E, Hp, Wp)
    return y


if __name__ == "__main__":
    key = jax.random.PRNGKey(0)
    kx, kx2, kp1, kp2 = jax.random.split(key, 4)

    B, C, H, W = 2, 3, 16, 16
    patch_size, embed_dim = 4, 96

    # Kernel uses MXU-native (DEFAULT) matmul precision with f32 accumulation;
    # reference is a true-f32 (HIGHEST) conv, hence the 2e-2 tolerance.
    TOL = dict(atol=2e-2, rtol=2e-2)

    # Case 1: defaults (norm_layer=None), divisible spatial dims.
    x = jax.random.normal(kx, (B, C, H, W), dtype=jnp.float32)
    pe = PatchEmbed(patch_size, C, embed_dim, use_norm=False, key=kp1)
    out = jax.block_until_ready(pe(x))
    ref = _reference(x, pe.weight, pe.bias, None, None,
                     (patch_size, patch_size))
    assert out.shape == (B, embed_dim, H // patch_size, W // patch_size)
    assert jnp.allclose(out, ref, **TOL), "no-norm mismatch"

    # Same case, channels-last output (skips the post-kernel NCHW transpose).
    out_nhwc = jax.block_until_ready(pe(x, output_format="NHWC"))
    assert out_nhwc.shape == (B, H // patch_size, W // patch_size, embed_dim)
    assert jnp.allclose(out_nhwc, ref.transpose(0, 2, 3, 1), **TOL), \
        "NHWC mismatch"

    # Case 2: LayerNorm enabled + non-divisible H/W (exercises the pad path).
    x2 = jax.random.normal(kx2, (B, C, 18, 14), dtype=jnp.float32)
    pe2 = PatchEmbed(patch_size, C, embed_dim, use_norm=True, key=kp2)
    out2 = jax.block_until_ready(pe2(x2))
    ref2 = _reference(x2, pe2.weight, pe2.bias, pe2.gamma, pe2.beta,
                      (patch_size, patch_size))
    assert out2.shape == (B, embed_dim, 5, 4)
    assert jnp.allclose(out2, ref2, **TOL), "norm mismatch"

    print("KERNEL_OK")
</pallas_src>

<mosaic_0001>
module attributes {stable_mosaic.version = 11 : i64} {
  func.func @_patch_embed_kernel(%arg0: i32, %arg1: memref<16x48xf32, #tpu.memory_space<vmem>>, %arg2: memref<48x96xf32, #tpu.memory_space<vmem>>, %arg3: memref<1x96xf32, #tpu.memory_space<vmem>>, %arg4: memref<16x96xf32, #tpu.memory_space<vmem>>) attributes {dimension_semantics = [#tpu.dimension_semantics<parallel>], iteration_bounds = array<i64: 2>, scalar_prefetch = 0 : i64, scratch_operands = 0 : i64, tpu.core_type = #tpu.core_type<tc>, window_params = [{transform_indices = @transform_0, window_bounds = array<i64: 16, 48>}, {pipeline_mode = #tpu.pipeline_mode<synchronous>, transform_indices = @transform_1, window_bounds = array<i64: 48, 96>}, {pipeline_mode = #tpu.pipeline_mode<synchronous>, transform_indices = @transform_2, window_bounds = array<i64: 1, 96>}, {transform_indices = @transform_3, window_bounds = array<i64: 16, 96>}]} {
    %c0 = arith.constant 0 : index
    %c0_0 = arith.constant 0 : index
    %0 = vector.load %arg1[%c0, %c0_0] : memref<16x48xf32, #tpu.memory_space<vmem>>, vector<16x48xf32>
    %c0_1 = arith.constant 0 : index
    %c0_2 = arith.constant 0 : index
    %1 = vector.load %arg2[%c0_1, %c0_2] : memref<48x96xf32, #tpu.memory_space<vmem>>, vector<48x96xf32>
    %cst = arith.constant dense<0.000000e+00> : vector<16x96xf32>
    %2 = tpu.matmul %0, %1, %cst {dimension_numbers = #tpu.dot_dimension_numbers<[1], [0], [0], [1], [0, 0, 1, 1], [], []>} : vector<16x48xf32>, vector<48x96xf32>, vector<16x96xf32> -> vector<16x96xf32>
    %c0_3 = arith.constant 0 : index
    %c0_4 = arith.constant 0 : index
    %3 = vector.load %arg3[%c0_3, %c0_4] : memref<1x96xf32, #tpu.memory_space<vmem>>, vector<1x96xf32>
    %4 = vector.broadcast %3 : vector<1x96xf32> to vector<16x96xf32>
    %5 = arith.addf %2, %4 : vector<16x96xf32>
    %c0_5 = arith.constant 0 : index
    %c0_6 = arith.constant 0 : index
    %6 = vector.load %arg4[%c0_5, %c0_6] : memref<16x96xf32, #tpu.memory_space<vmem>>, vector<16x96xf32>
    tpu.vector_store %arg4[%c0_5, %c0_6], %5 {strides = array<i32>} : memref<16x96xf32, #tpu.memory_space<vmem>>, vector<16x96xf32>,
    return
  }
  func.func @transform_0(%arg0: i32) -> (i32, i32) {
    %c0_i32 = arith.constant 0 : i32
    %c0_i32_0 = arith.constant 0 : i32
    return %arg0, %c0_i32 : i32, i32
  }
  func.func @transform_1(%arg0: i32) -> (i32, i32) {
    %c0_i32 = arith.constant 0 : i32
    %c0_i32_0 = arith.constant 0 : i32
    %c0_i32_1 = arith.constant 0 : i32
    return %c0_i32, %c0_i32_0 : i32, i32
  }
  func.func @transform_2(%arg0: i32) -> (i32, i32) {
    %c0_i32 = arith.constant 0 : i32
    %c0_i32_0 = arith.constant 0 : i32
    %c0_i32_1 = arith.constant 0 : i32
    return %c0_i32, %c0_i32_0 : i32, i32
  }
  func.func @transform_3(%arg0: i32) -> (i32, i32) {
    %c0_i32 = arith.constant 0 : i32
    %c0_i32_0 = arith.constant 0 : i32
    return %arg0, %c0_i32 : i32, i32
  }
}

</mosaic_0001>

<bundles_post_ra>
// kernel: tpu_custom_call.1
= control target key start
LH: loop header
LB: loop body
LE: loop exit
PB: predicated region body
PF: predicated region fallthrough
CT: control target
= control target key end

     0   :  { %8 = vsyncpa [#allocation3], 0  ;;  %s750_s0 = inlined_call_operand.hbm [shape: f32[32,48], index: 0, kind: input, shape index: {}]   ;;  %s751_s1 = inlined_call_operand.hbm [shape: f32[48,96], index: 1, kind: input, shape index: {}]   ;;  %s752_s2 = inlined_call_operand.vmem [shape: f32[1,96], index: 2, kind: input, shape index: {}]   ;;  %s753_s3 = inlined_call_operand.hbm [shape: f32[32,96], index: 3, kind: output, shape index: {}]  }
   0x1   :  { %10 = vsyncpa [#allocation3 + $0x1], 0 }
   0x2   :  { %11 = vsyncpa [#allocation6], 0 }
   0x3   :  { %12 = vsyncpa [#allocation4], 0 }
   0x4   :  { %14 = vsyncpa [#allocation4 + $0x1], 0  ;;  %s599_s12 = smov 0   ;;  %s601_s13 = smov 0  }
   0x5   :  { %s603_s14 = smov 0   ;;  %s605_s15 = smov 0  }
   0x6 LB: > { %s620_s16 = sadd.s32 4294967295, %s572_s15   ;;  %s354_s17 = sadd.s32 4294967294, %s572_s15   ;;  %s572_s15 = sphi %s605_s15, %s763_s15   ;;  %s568_s14 = sphi %s603_s14, %s762_s14   ;;  %s564_s13 = sphi %s601_s13, %s761_s13   ;;  %s560_s12 = sphi %s599_s12, %s760_s12  }
   0x7   : > { %p40_p0 = scmp.ne.s32.totalorder %s564_s13, %s560_s12  ;;  %p41_p1 = scmp.eq.s32.totalorder %s620_s16, 0 }
   0x8   : > { %p106_p2 = scmp.eq.s32.totalorder %s620_s16, 1  ;;  %p112_p3 = scmp.eq.s32.totalorder %s354_s17, 1 }
   0x9   : > { %p629_p4 = por %p41_p1, %p40_p0  ;;  %p355_p5 = scmp.ge.s32.totalorder %s572_s15, 1 }
   0xa   : > { %p634_p6 = por %p112_p3, %p40_p0  ;;  %p119_p7 = scmp.lt.s32.totalorder %s572_s15, 3 }
   0xb   : > { %s130_s22 = sshll.u32 %s751_s1, 4  ;;  %s574_s24 = smov [#allocation5]   ;;  %s131_s22 = int_to_ptr.hbm [resolvable:$true] %s130_s22 }
   0xc   : > { %p642_p8 = pnand %p355_p5, %p119_p7  ;;  %s132_s25 = sshll.u32 %s574_s24, 4  ;;  %s133_s25 = int_to_ptr.vmem [resolvable:$true] %s132_s25 }
   0xd   : > { %s652_s26 = sadd.s32 1, %s572_s15   ;;  %s575_s27 = smov 128  }
   0xe   : > { %p388_p9 = pneg %p642_p8  ;;  %s576_s28 = smov 8  }
   0xf   : > { %s24_s29 = ssub.s32 %s572_s15, %s652_s26  ;;  %s27_s30 = sadd.s32 1, %s568_s14 }
  0x10   : > { %p389_p10 = pnand %p388_p9, %p41_p1  ;;  %p25_p12 = scmp.eq.s32.totalorder %s24_s29, 0 }
  0x11   : > { %p34_p13 = scmp.ne.s32.totalorder %s568_s14, %s564_s13  ;;  %p35_p0 = scmp.eq.s32.totalorder %s572_s15, 0 }
  0x12   : > { %391 = dma.hbm_to_vmem [thread:$0]  (!%p389_p10), %s131_s22, 768, %s133_s25, [#allocation6], %s575_s27, %s575_s27, %s576_s28  }
  0x13   : > { %s664_s4 = scalar_select %p25_p12, %s568_s14, %s27_s30  }
  0x14   : > { %p668_p3 = por %p106_p2, %p34_p13  ;;  %p401_p5 = scmp.lt.s32.totalorder %s572_s15, 2 }
  0x15   : > { %s149_s6 = sand.u32 1, %s568_s14   ;;  %s372_s7 = sshll.u32 %s572_s15, 4 }
  0x16   : > { %p36_p7 = por %p35_p0, %p34_p13  ;;  %s358_s8 = sshll.u32 %s149_s6, 4 }
  0x17   : > { %s158_s11 = scalar_lea.hbm %s750_s0, %s372_s7  ;;  %s153_s20 = scalar_lea.vmem [#allocation2], %s358_s8 }
  0x18   : > { %s159_s17 = sshll.u32 %s158_s11, 4  ;;  %s161_s21 = sshll.u32 %s153_s20, 4  ;;  %s160_s17 = int_to_ptr.hbm [resolvable:$true] %s159_s17  ;;  %s162_s21 = int_to_ptr.vmem [resolvable:$true] %s161_s21 }
  0x19   : > { %p678_p9 = pnand %p401_p5, %p36_p7  ;;  %s150_s24 = scalar_lea.sflag [#allocation3], %s149_s6 }
  0x1a   : > { %s472_s25 = sshra.s32 %s160_s17, 4  ;;  %s479_s8 = scalar_lea.hbm %s750_s0, 32  ;;  %s473_s25 = int_to_ptr.hbm [resolvable:$true] %s472_s25 }
  0x1b   : > { %s474_s29 = scalar_lea.hbm %s473_s25, 16  ;;  %p476_p10 = pneg %p678_p9 }
  0x1c   : > { %p475_p2 = scmp.ne.s32.totalorder %s473_s25, %s474_s29  ;;  %p480_p0 = scmp.lt.s32.totalorder %s473_s25, %s750_s0 }
  0x1d   : > { %p481_p5 = scmp.lt.s32.totalorder %s479_s8, %s474_s29 }
  0x1e   : > { %p477_p12 = pnand %p476_p10, %p475_p2 }
  0x1f   : > { %p482_p7 = por %p481_p5, %p480_p0 }
  0x20   : > { %p478_p13 = pneg %p477_p12 }
  0x22   : > { %p483_p11 = pnand %p482_p7, %p478_p13 }
  0x24   : > { %486 = shalt.err (!%p483_p11)
}
  0x25   : > { %395 = dma.hbm_to_vmem [thread:$0]  (!%p678_p9), %s160_s17, 256, %s162_s21, %s150_s24, %s575_s27, %s575_s27, %s576_s28  }
  0x26   : > { %173 = sbr.rel (%p642_p8) target bundleno = 191 (0xbf), region = 32  ;;  %s698_s6 = sand.u32 (!%p642_p8), 1, %s564_s13  }
  0x27   : > { %s362_s11 = sshll.u32 (!%p642_p8), %s698_s6, 4  ;;  %s176_s20 = scalar_lea.sflag (!%p642_p8), [#allocation3], %s698_s6 }
  0x28   : > { %s179_s25 = scalar_lea.vmem (!%p642_p8), [#allocation2], %s362_s11 }
  0x2b   : > { %547 = dma.done.wait (%p629_p4), %s176_s20, 256  }
  0x2c   : > { %549 = vsyncadd (%p629_p4), %s176_s20, 4294967040 }
  0x2d   : > { %551 = dma.done.wait (%p41_p1), [#allocation6], 768  }
  0x2e   : > { %553 = vsyncadd (%p41_p1), [#allocation6], 4294966528  ;;  %v217_v0 = vld [vmem:[#allocation5 + $0x28] sm:$0xff]  ;;  %v216_v1 = vld [vmem:[#allocation5 + $0x20] sm:$0xff]  ;;  %vm222_vm0 = vcmask 392192   ;;  %s373_s18 = sshll.u32 %s620_s16, 4 }
  0x2f   : > { %239 = vmatpush.msra.mxu0 %v217_v0  ;;  %374 = vmatpush.msra.mxu1 %v217_v0  ;;  %v215_v2 = vld [vmem:[#allocation5 + $0x18] sm:$0xff]  ;;  %v214_v3 = vld [vmem:[#allocation5 + $0x10] sm:$0xff]  ;;  %v213_v4 = vld [vmem:[#allocation5 + $0x8] sm:$0xff]  ;;  %s267_s28 = scalar_lea.hbm %s753_s3, %s373_s18  ;;  %s207_s22 = scalar_lea.vmem [#allocation7], %s362_s11  ;;  %vm252_vm1 = vcmask 785408  }
  0x30   : > { %v212_v5 = vld [vmem:[#allocation5] sm:$0xff]  ;;  %v211_v7 = vld [vmem:[%s179_s25 + $0x8] sm:$0xff]  ;;  %s268_s24 = sshll.u32 %s207_s22, 4  ;;  %s270_s29 = sshll.u32 %s267_s28, 4  ;;  %s269_s24 = int_to_ptr.vmem [resolvable:$true] %s268_s24  ;;  %s271_s29 = int_to_ptr.hbm [resolvable:$true] %s270_s29 }
  0x31   : > { %240 = vmatpush.msra.mxu0 %v216_v1  ;;  %375 = vmatpush.msra.mxu1 %v216_v1  ;;  %v210_v6 = vld [vmem:[%s179_s25] sm:$0xff]  ;;  %s256_s16 = scalar_lea.sflag [#allocation4], %s698_s6  ;;  %s516_s30 = sshra.s32 %s271_s29, 4  ;;  %s517_s30 = int_to_ptr.hbm [resolvable:$true] %s516_s30 }
  0x32   : > { %v441_v8 = vld [vmem:[%s752_s2] ss:$0 sm:$0xff]  ;;  %s518_s7 = scalar_lea.hbm %s517_s30, 16  ;;  %s522_s10 = scalar_lea.hbm %s753_s3, 32 }
  0x33   : > { %241 = vmatpush.msra.mxu0 %v215_v2  ;;  %376 = vmatpush.msra.mxu1 %v215_v2  ;;  %p519_p1 = scmp.ne.s32.totalorder %s517_s30, %s518_s7  ;;  %p523_p11 = scmp.lt.s32.totalorder %s517_s30, %s753_s3 }
  0x34   : > { %p524_p9 = scmp.lt.s32.totalorder %s522_s10, %s518_s7 }
  0x35   : > { %242 = vmatpush.msra.mxu0 %v214_v3  ;;  %377 = vmatpush.msra.mxu1 %v214_v3  ;;  %p520_p4 = pnand %p519_p1, %p668_p3 }
  0x36   : > { %p525_p2 = por %p524_p9, %p523_p11 }
  0x37   : > { %243 = vmatpush.msra.mxu0 %v213_v4  ;;  %378 = vmatpush.msra.mxu1 %v213_v4  ;;  %p521_p8 = pneg %p520_p4 }
  0x39   : > { %244 = vmatpush.msra.mxu0 %v212_v5  ;;  %379 = vmatpush.msra.mxu1 %v212_v5  ;;  %p526_p10 = pnand %p525_p2, %p521_p8 }
  0x3a   : > { %365 = vmatmul.msk.f32.vlgmr.msra.gmra.mxu0 %vm222_vm0, %v210_v6  ;;  %366 = vmatmul.msk.f32.vlgmr.msra.gmra.mxu1 %vm222_vm0, %v211_v7 }
  0xb7   : > { %v246_v9 = vpop.f32.mrf.mxu0  ;;  %v249_v10 = vpop.f32.mrf.mxu1 }
  0xb8   : > { %v247_v11 = vadd.f32 %v441_v8, %v246_v9  ;;  %v250_v12 = vadd.f32 %v441_v8, %v249_v10 }
  0xba   : > { %253 = vst.msk [vmem:[%s207_s22] sm:$0xff] %vm252_vm1, %v247_v11 }
  0xbb   : > { %254 = vst.msk [vmem:[%s207_s22 + $0x8] sm:$0xff] %vm252_vm1, %v250_v12 }
  0xbc   : > { %529 = shalt.err (!%p526_p10)
}
  0xbd   : > { %s577_s6 = smov 128   ;;  %s578_s25 = smov 8  }
  0xbe   : > { %386 = dma.vmem_to_hbm [thread:$0]  (%p668_p3), %s269_s24, 256, %s271_s29, %s256_s16, %s577_s6, %s577_s6, %s578_s25  }
  0xbf PF: > { %s285_s18 = sand.u32 1, %s560_s12   ;;  %p759_p12 = scmp.ge.s32.totalorder %s572_s15, 2 }
  0xc0   : > { %s286_s23 = scalar_lea.sflag [#allocation4], %s285_s18 }
  0xc1   : > { %p397_p13 = pnand %p759_p12, %p634_p6 }
  0xc3   : > { %p398_p0 = pneg %p397_p13 }
  0xc5   : > { %555 = dma.done.wait (%p398_p0), %s286_s23, 256  }
  0xc6   : > { %557 = vsyncadd (%p398_p0), %s286_s23, 4294967040  ;;  %p17_p5 = scmp.ge.s32.totalorder %s652_s26, 4   ;;  %s760_s12 = smov %s564_s13 }
  0xc7   : > { %s761_s13 = smov %s568_s14  ;;  %s762_s14 = smov %s664_s4 }
  0xc8   : > { %s763_s15 = smov %s652_s26  ;;  %19 = sbr.rel (!%p17_p5) target bundleno = 6 (0x6), region = 81 }
  0xcd   :  { %292 = vsyncpa [#allocation3], 1 }
  0xce   :  { %294 = vsyncpa [#allocation3 + $0x1], 1 }
  0xcf   :  { %295 = vsyncpa [#allocation6], 1 }
  0xd0   :  { %296 = vsyncpa [#allocation4], 1 }
  0xd1   :  { %298 = vsyncpa [#allocation4 + $0x1], 1 }

</bundles_post_ra>
